<compile_context>
chip_gen: v7x
topology: tpu7x:2x2x1
jax: 0.10.0
libtpu: 0.0.40
codegen_flags: <defaults>
</compile_context>

<pallas_src>
import jax
import jax.numpy as jnp
import numpy as np
from jax.experimental import pallas as pl
from jax.experimental.pallas import tpu as pltpu

N_MODES_FIXED = 148  # hard-coded in the module: nn.Parameter(torch.FloatTensor(1, 1, 148))


def _round_up(x, m):
    return (x + m - 1) // m * m


def _heat_diffusion_kernel(phi_ref, t_ref, m_ref, o_ref):
    # phi_ref : (Bb, N, T)  native-layout phi_0 tile
    # t_ref   : (Bb, T, 1)  per-(batch, time) scalar column
    # m_ref   : (1, 1, N)   shared learnable parameter row (resident every step)
    # o_ref   : (Bb, T, N)  output tile (modes lane-dense)
    phi_t = jnp.swapaxes(phi_ref[...], 1, 2)            # in-kernel XLU transpose -> (Bb, T, N)
    o_ref[...] = phi_t + t_ref[...] * m_ref[...]        # broadcast FMA on the VPU


def _pick_batch_tile(B, per_batch_padded_bytes, target_tile_bytes=4 << 20):
    """Batches per grid step: sized so the *padded* per-step tile stays around
    target_tile_bytes (double-buffered footprint ~2x that), and capped at
    ceil(B/2) so there are always >= 2 parallel grid steps when B >= 2
    (lets Mosaic shard across both TensorCores on v7x)."""
    bb = max(1, target_tile_bytes // max(1, per_batch_padded_bytes))
    if B >= 2:
        bb = min(bb, -(-B // 2))
    return int(min(bb, B))


def heat_diffusion_forward(phi_0, t, m):
    """phi_0: (B, N, T) f32, t: (B, T) f32, m: (1, 1, N) f32 -> (B, T, N) f32."""
    B, N, T = phi_0.shape
    assert t.shape == (B, T)
    assert m.shape == (1, 1, N)
    itemsize = np.dtype(phi_0.dtype).itemsize

    # Cheap reshapes only (no data movement passes over phi_0).
    t3 = t.reshape(B, T, 1)
    m3 = m.reshape(1, 1, N)

    # Padded per-batch VMEM footprint of one grid step (f32: 8-sublane x 128-lane tiles).
    pad_phi = _round_up(N, 8) * _round_up(T, 128)     # native (N, T) tile, T on lanes
    pad_t = _round_up(T, 8) * 128                     # (T, 1) column tile
    pad_out = _round_up(T, 8) * _round_up(N, 128)     # (T, N) output tile, N on lanes
    per_batch_bytes = (pad_phi + pad_t + pad_out) * itemsize

    Bb = _pick_batch_tile(B, per_batch_bytes)
    grid = (pl.cdiv(B, Bb),)                          # ragged last block is fine (elementwise)

    # Explicit VMEM budget from the padded footprint: double-buffered input/output
    # tiles + resident m row + headroom, clamped to a value valid on v5e/v6e/v7x.
    m_bytes = 8 * _round_up(N, 128) * itemsize
    tile_bytes = Bb * per_batch_bytes
    vmem_limit = int(min(max(2 * (tile_bytes + m_bytes) + (4 << 20), 8 << 20), 32 << 20))

    out = pl.pallas_call(
        _heat_diffusion_kernel,
        out_shape=jax.ShapeDtypeStruct((B, T, N), phi_0.dtype),
        grid_spec=pltpu.PrefetchScalarGridSpec(
            num_scalar_prefetch=0,
            grid=grid,
            in_specs=[
                pl.BlockSpec((Bb, N, T), lambda b: (b, 0, 0)),   # phi_0, native layout
                pl.BlockSpec((Bb, T, 1), lambda b: (b, 0, 0)),   # t column
                pl.BlockSpec((1, 1, N), lambda b: (0, 0, 0)),    # shared m (same block every step)
            ],
            out_specs=pl.BlockSpec((Bb, T, N), lambda b: (b, 0, 0)),
        ),
        compiler_params=pltpu.CompilerParams(
            dimension_semantics=("parallel",),   # independent batch chunks -> megacore-shardable
            vmem_limit_bytes=vmem_limit,
        ),
        cost_estimate=pl.CostEstimate(
            flops=2 * B * T * N,                                   # one FMA per output element
            transcendentals=0,
            bytes_accessed=(2 * B * T * N + B * T + N) * itemsize,  # phi + out + t + m (no extra pass)
        ),
    )(phi_0, t3, m3)

    return out


def init_m(key, n=N_MODES_FIXED):
    # xavier_uniform_ on a (1, 1, n) tensor: fan_in = fan_out = n
    bound = float(np.sqrt(6.0 / (n + n)))
    return jax.random.uniform(key, (1, 1, n), dtype=jnp.float32,
                              minval=-bound, maxval=bound)


if __name__ == "__main__":
    key = jax.random.PRNGKey(0)
    k_m, k_phi, k_t = jax.random.split(key, 3)

    B, T, N = 2, 8, N_MODES_FIXED  # N is fixed at 148 by the module definition

    m = init_m(k_m, N)
    phi_0 = jax.random.normal(k_phi, (B, N, T), dtype=jnp.float32)
    t = jax.random.normal(k_t, (B, T), dtype=jnp.float32)

    out = heat_diffusion_forward(phi_0, t, m)
    out = jax.block_until_ready(out)

    # Reference (pure JAX) check of the PyTorch semantics.
    ref = jnp.transpose(phi_0, (0, 2, 1)) + t[:, :, None] * m
    np.testing.assert_allclose(np.asarray(out), np.asarray(ref), rtol=1e-6, atol=1e-6)
    assert out.shape == (B, T, N)

    print("KERNEL_OK")
</pallas_src>

<mosaic_0001>
module attributes {stable_mosaic.version = 11 : i64} {
  func.func @_heat_diffusion_kernel(%arg0: i32, %arg1: memref<1x148x8xf32, #tpu.memory_space<vmem>>, %arg2: memref<1x8x1xf32, #tpu.memory_space<vmem>>, %arg3: memref<1x1x148xf32, #tpu.memory_space<vmem>>, %arg4: memref<1x8x148xf32, #tpu.memory_space<vmem>>) attributes {dimension_semantics = [#tpu.dimension_semantics<parallel>], iteration_bounds = array<i64: 2>, scalar_prefetch = 0 : i64, scratch_operands = 0 : i64, tpu.core_type = #tpu.core_type<tc>, window_params = [{transform_indices = @transform_0, window_bounds = array<i64: 1, 148, 8>}, {transform_indices = @transform_1, window_bounds = array<i64: 1, 8, 1>}, {pipeline_mode = #tpu.pipeline_mode<synchronous>, transform_indices = @transform_2, window_bounds = array<i64: 1, 1, 148>}, {transform_indices = @transform_3, window_bounds = array<i64: 1, 8, 148>}]} {
    %c0 = arith.constant 0 : index
    %c0_0 = arith.constant 0 : index
    %c0_1 = arith.constant 0 : index
    %0 = vector.load %arg1[%c0, %c0_0, %c0_1] : memref<1x148x8xf32, #tpu.memory_space<vmem>>, vector<1x148x8xf32>
    %1 = tpu.transpose %0, [0, 2, 1] : vector<1x148x8xf32> -> vector<1x8x148xf32>
    %c0_2 = arith.constant 0 : index
    %c0_3 = arith.constant 0 : index
    %c0_4 = arith.constant 0 : index
    %2 = vector.load %arg2[%c0_2, %c0_3, %c0_4] : memref<1x8x1xf32, #tpu.memory_space<vmem>>, vector<1x8x1xf32>
    %c0_5 = arith.constant 0 : index
    %c0_6 = arith.constant 0 : index
    %c0_7 = arith.constant 0 : index
    %3 = vector.load %arg3[%c0_5, %c0_6, %c0_7] : memref<1x1x148xf32, #tpu.memory_space<vmem>>, vector<1x1x148xf32>
    %4 = vector.broadcast %2 : vector<1x8x1xf32> to vector<1x8x148xf32>
    %5 = vector.broadcast %3 : vector<1x1x148xf32> to vector<1x8x148xf32>
    %6 = arith.mulf %4, %5 : vector<1x8x148xf32>
    %7 = arith.addf %1, %6 : vector<1x8x148xf32>
    %c0_8 = arith.constant 0 : index
    %c0_9 = arith.constant 0 : index
    %c0_10 = arith.constant 0 : index
    %8 = vector.load %arg4[%c0_8, %c0_9, %c0_10] : memref<1x8x148xf32, #tpu.memory_space<vmem>>, vector<1x8x148xf32>
    tpu.vector_store %arg4[%c0_8, %c0_9, %c0_10], %7 {strides = array<i32>} : memref<1x8x148xf32, #tpu.memory_space<vmem>>, vector<1x8x148xf32>,
    return
  }
  func.func @transform_0(%arg0: i32) -> (i32, i32, i32) {
    %c0_i32 = arith.constant 0 : i32
    %c0_i32_0 = arith.constant 0 : i32
    %c0_i32_1 = arith.constant 0 : i32
    return %arg0, %c0_i32, %c0_i32_0 : i32, i32, i32
  }
  func.func @transform_1(%arg0: i32) -> (i32, i32, i32) {
    %c0_i32 = arith.constant 0 : i32
    %c0_i32_0 = arith.constant 0 : i32
    %c0_i32_1 = arith.constant 0 : i32
    return %arg0, %c0_i32, %c0_i32_0 : i32, i32, i32
  }
  func.func @transform_2(%arg0: i32) -> (i32, i32, i32) {
    %c0_i32 = arith.constant 0 : i32
    %c0_i32_0 = arith.constant 0 : i32
    %c0_i32_1 = arith.constant 0 : i32
    %c0_i32_2 = arith.constant 0 : i32
    return %c0_i32, %c0_i32_0, %c0_i32_1 : i32, i32, i32
  }
  func.func @transform_3(%arg0: i32) -> (i32, i32, i32) {
    %c0_i32 = arith.constant 0 : i32
    %c0_i32_0 = arith.constant 0 : i32
    %c0_i32_1 = arith.constant 0 : i32
    return %arg0, %c0_i32, %c0_i32_0 : i32, i32, i32
  }
}

</mosaic_0001>

<bundles_post_ra>
// kernel: tpu_custom_call.1
= control target key start
LH: loop header
LB: loop body
LE: loop exit
PB: predicated region body
PF: predicated region fallthrough
CT: control target
= control target key end

     0   :  { %8 = vsyncpa [#allocation3], 0  ;;  %s649_s0 = inlined_call_operand.vmem [shape: f32[2,148,8], index: 0, kind: input, shape index: {}]   ;;  %s650_s1 = inlined_call_operand.vmem [shape: f32[2,8,1], index: 1, kind: input, shape index: {}]   ;;  %s651_s2 = inlined_call_operand.vmem [shape: f32[1,1,148], index: 2, kind: input, shape index: {}]   ;;  %s652_s3 = inlined_call_operand.hbm [shape: f32[2,8,148], index: 3, kind: output, shape index: {}]  }
   0x1   :  { %10 = vsyncpa [#allocation3 + $0x1], 0  ;;  %s522_s12 = smov 0   ;;  %s524_s13 = smov 0  }
   0x2   :  { %s526_s14 = smov 0   ;;  %s528_s15 = smov 0  }
   0x3 LB: > { %s543_s16 = sadd.s32 4294967295, %s498_s15   ;;  %s380_s17 = sadd.s32 4294967294, %s498_s15   ;;  %s498_s15 = sphi %s528_s15, %s658_s15   ;;  %s494_s14 = sphi %s526_s14, %s657_s14   ;;  %s490_s13 = sphi %s524_s13, %s656_s13   ;;  %s486_s12 = sphi %s522_s12, %s655_s12  }
   0x4   : > { %s547_s18 = sadd.s32 1, %s498_s15   ;;  %s96_s19 = sadd.s32 1, %s494_s14 }
   0x5   : > { %s93_s20 = ssub.s32 %s498_s15, %s547_s18  ;;  %p106_p0 = scmp.ne.s32.totalorder %s494_s14, %s490_s13 }
   0x6   : > { %p94_p1 = scmp.eq.s32.totalorder %s93_s20, 0  ;;  %p107_p2 = scmp.eq.s32.totalorder %s543_s16, 1 }
   0x7   : > { %p112_p3 = scmp.ne.s32.totalorder %s490_s13, %s486_s12  ;;  %p113_p4 = scmp.eq.s32.totalorder %s380_s17, 1 }
   0x8   : > { %s558_s21 = scalar_select %p94_p1, %s494_s14, %s96_s19  }
   0x9   : > { %p560_p5 = por %p107_p2, %p106_p0  ;;  %p564_p6 = por %p113_p4, %p112_p3 }
   0xa   : > { %p383_p7 = scmp.ge.s32.totalorder %s498_s15, 1  ;;  %p149_p8 = scmp.lt.s32.totalorder %s498_s15, 3 }
   0xc   : > { %p150_p9 = pnand %p383_p7, %p149_p8 }
   0xd   : > { %p177_p10 = scmp.lt.s32.totalorder (!%p150_p9), %s543_s16, 1  ;;  %v500_v0 = vmov (!%p150_p9), 0   ;;  %v277_v21 = vlaneseq (!%p150_p9)  ;;  %v270_v24 = vld [vmem:[%s651_s2] sm:$0x3] (!%p150_p9)  ;;  %s174_s8 = sand.u32 (!%p150_p9), 1, %s490_s13   ;;  %vm292_vm0 = vcmask (!%p150_p9), 162816  }
   0xe   : > { %153 = sbr.rel (%p150_p9) target bundleno = 201 (0xc9), region = 32  ;;  %435 = vset.pattern.permute.xlu0 (!%p150_p9), %v500_v0  ;;  %s384_s9 = sshll.u32 (!%p150_p9), %s174_s8, 4 }
   0xf   : > { %v278_v22 = vshrl.u32 (!%p150_p9), %v277_v21, 7  ;;  %s176_s10 = scalar_lea.vmem (!%p150_p9), [#allocation2], %s384_s9  ;;  %s392_s11 = sshll.u32 (!%p150_p9), %s543_s16, 8 }
  0x10   : > { %s309_s17 = sshll.u32 (!%p150_p9), %s176_s10, 4  ;;  %s609_s17 = int_to_ptr.vmem [resolvable:$true] %s309_s17 }
  0x11   : > { %v283_v23 = vsub.s32 (!%p150_p9), 1, %v278_v22  ;;  %v279_v30 = vsub.s32 (!%p150_p9), 0, %v278_v22 }
  0x13   : > { %v284_v25 = vrot.slane (!%p150_p9), %v270_v24, %v283_v23  ;;  %v280_v31 = vrot.slane (!%p150_p9), %v270_v24, %v279_v30 }
  0x15   : > { %s178_s24 = scalar_select %p177_p10, %s543_s16, 1 }
  0x16   : > { %s501_s16 = smov [#allocation2]  }
  0x17   : > { %s386_s25 = sshll.u32 %s178_s24, 3  ;;  %s393_s26 = smul.u32 152, %s178_s24 }
  0x18   : > { %s185_s29 = scalar_lea.vmem %s650_s1, %s386_s25  ;;  %s607_s24 = scalar_lea.hbm %s652_s3, %s392_s11 }
  0x19   : > { %v269_v1 = vld [vmem:[%s185_s29] sm:$0xff]  ;;  %s578_s5 = scalar_lea.vmem %s649_s0, %s393_s26  ;;  %s295_s25 = scalar_lea.sflag [#allocation3], %s174_s8 }
  0x1a   : > { %273 = vperm.xlu0 %435, %v269_v1   ;;  %v202_v2 = vld [vmem:[%s578_s5 + $0x80] sm:$0xff]  ;;  %v203_v3 = vld [vmem:[%s578_s5 + $0x88] sm:$0xff]  ;;  %v204_v4 = vld [vmem:[%s578_s5 + $0x90] sm:$0xf]  ;;  %s436_s26 = scalar_lea.vmem %s609_s17, 256  ;;  %s440_s27 = sshll.u32 %s501_s16, 4  ;;  %s441_s27 = int_to_ptr.vmem [resolvable:$false] %s440_s27 }
  0x1b   : > { %237 = vxpose.xlu1.b32.start [1/3] (short) (narrow) %v202_v2, 8  ;;  %v186_v5 = vld [vmem:[%s578_s5] sm:$0xff]  ;;  %v187_v6 = vld [vmem:[%s578_s5 + $0x8] sm:$0xff]  ;;  %v188_v7 = vld [vmem:[%s578_s5 + $0x10] sm:$0xff]  ;;  %p437_p11 = scmp.ne.s32.totalorder %s609_s17, %s436_s26  ;;  %s442_s28 = scalar_lea.vmem %s441_s27, 512 }
  0x1c   : > { %v189_v8 = vld [vmem:[%s578_s5 + $0x18] sm:$0xff]  ;;  %v190_v9 = vld [vmem:[%s578_s5 + $0x20] sm:$0xff]  ;;  %v191_v10 = vld [vmem:[%s578_s5 + $0x28] sm:$0xff]  ;;  %p443_p0 = scmp.lt.s32.totalorder %s609_s17, %s441_s27  ;;  %p444_p1 = scmp.lt.s32.totalorder %s442_s28, %s436_s26 }
  0x1d   : > { %v192_v11 = vld [vmem:[%s578_s5 + $0x30] sm:$0xff]  ;;  %v193_v12 = vld [vmem:[%s578_s5 + $0x38] sm:$0xff]  ;;  %v194_v13 = vld [vmem:[%s578_s5 + $0x40] sm:$0xff]  ;;  %p438_p12 = pnand %p437_p11, %p560_p5 }
  0x1e   : > { %v195_v14 = vld [vmem:[%s578_s5 + $0x48] sm:$0xff]  ;;  %v196_v15 = vld [vmem:[%s578_s5 + $0x50] sm:$0xff]  ;;  %v197_v16 = vld [vmem:[%s578_s5 + $0x58] sm:$0xff]  ;;  %p445_p2 = por %p444_p1, %p443_p0 }
  0x1f   : > { %238 = vxpose.xlu1.b32.cont [2/3] (short) (narrow) %v203_v3, 8  ;;  %v198_v17 = vld [vmem:[%s578_s5 + $0x60] sm:$0xff]  ;;  %v199_v18 = vld [vmem:[%s578_s5 + $0x68] sm:$0xff]  ;;  %v200_v19 = vld [vmem:[%s578_s5 + $0x70] sm:$0xff]  ;;  %p439_p13 = pneg %p438_p12 }
  0x20   : > { %v201_v20 = vld [vmem:[%s578_s5 + $0x78] sm:$0xff] }
  0x21   : > { %p446_p3 = pnand %p445_p2, %p439_p13 }
  0x23   : > { %239 = vxpose.xlu1.b32.end [3/3] (short) (narrow) %v204_v4, 8 }
  0x38   : > { %205 = vxpose.xlu0.b32.start [1/16] (narrow) %v186_v5, 8 }
  0x3c   : > { %206 = vxpose.xlu0.b32.cont [2/16] (narrow) %v187_v6, 8 }
  0x40   : > { %207 = vxpose.xlu0.b32.cont [3/16] (narrow) %v188_v7, 8 }
  0x44   : > { %208 = vxpose.xlu0.b32.cont [4/16] (narrow) %v189_v8, 8 }
  0x48   : > { %209 = vxpose.xlu0.b32.cont [5/16] (narrow) %v190_v9, 8 }
  0x4c   : > { %210 = vxpose.xlu0.b32.cont [6/16] (narrow) %v191_v10, 8 }
  0x50   : > { %211 = vxpose.xlu0.b32.cont [7/16] (narrow) %v192_v11, 8 }
  0x54   : > { %212 = vxpose.xlu0.b32.cont [8/16] (narrow) %v193_v12, 8 }
  0x58   : > { %213 = vxpose.xlu0.b32.cont [9/16] (narrow) %v194_v13, 8 }
  0x5c   : > { %214 = vxpose.xlu0.b32.cont [10/16] (narrow) %v195_v14, 8 }
  0x60   : > { %215 = vxpose.xlu0.b32.cont [11/16] (narrow) %v196_v15, 8 }
  0x64   : > { %216 = vxpose.xlu0.b32.cont [12/16] (narrow) %v197_v16, 8 }
  0x68   : > { %217 = vxpose.xlu0.b32.cont [13/16] (narrow) %v198_v17, 8 }
  0x6c   : > { %218 = vxpose.xlu0.b32.cont [14/16] (narrow) %v199_v18, 8 }
  0x70   : > { %219 = vxpose.xlu0.b32.cont [15/16] (narrow) %v200_v19, 8 }
  0x74   : > { %220 = vxpose.xlu0.b32.end [16/16] (narrow) %v201_v20, 8 }
  0x99   : > { %v274_v26 = vpop.permute.xlu0 %273 }
  0x9a   : > { %v288_v27 = vmul.f32 %v284_v25, %v274_v26  ;;  %v287_v32 = vmul.f32 %v280_v31, %v274_v26 }
  0x9b   : > { %v253_v28 = vpop.trf.xlu1 }
  0x9c   : > { %v290_v29 = vadd.f32 %v288_v27, %v253_v28 }
  0x9e   : > { %293 = vst.msk [vmem:[%s176_s10 + $0x8] sm:$0xff] %vm292_vm0, %v290_v29 }
  0xb8   : > { %v221_v33 = vpop.trf.xlu0 }
  0xb9   : > { %v289_v34 = vadd.f32 %v287_v32, %v221_v33 }
  0xbb   : > { %291 = vst [vmem:[%s176_s10] sm:$0xff] %v289_v34 }
  0xbc   : > { %449 = shalt.err (!%p446_p3)
}
  0xbd   : > { %s450_s29 = scalar_lea.hbm %s607_s24, 256  ;;  %s454_s5 = scalar_lea.hbm %s652_s3, 512 }
  0xbe   : > { %p451_p4 = scmp.ne.s32.totalorder %s607_s24, %s450_s29  ;;  %p455_p9 = scmp.lt.u32.totalorder %s607_s24, %s652_s3 }
  0xbf   : > { %p456_p10 = scmp.lt.u32.totalorder %s454_s5, %s450_s29  ;;  %p458_p12 = scmp.lt.u32.totalorder %s450_s29, %s607_s24 }
  0xc0   : > { %p452_p7 = pnand %p451_p4, %p560_p5 }
  0xc1   : > { %p457_p11 = por %p456_p10, %p455_p9 }
  0xc2   : > { %p453_p8 = pneg %p452_p7 }
  0xc3   : > { %p459_p13 = por %p458_p12, %p457_p11 }
  0xc5   : > { %p460_p0 = pnand %p459_p13, %p453_p8 }
  0xc7   : > { %463 = shalt.err (!%p460_p0)
}
  0xc8   : > { %394 = dma.vmem_to_hbm [thread:$0]  (%p560_p5), %s609_s17, 256, %s607_s24, %s295_s25  }
  0xc9 PF: > { %p400_p1 = scmp.ge.s32.totalorder %s498_s15, 2  ;;  %s321_s8 = sand.u32 1, %s486_s12  }
  0xca   : > { %s322_s9 = scalar_lea.sflag [#allocation3], %s321_s8 }
  0xcb   : > { %p397_p2 = pnand %p400_p1, %p564_p6 }
  0xcd   : > { %481 = dma.done.wait (!%p397_p2), %s322_s9, 256  }
  0xce   : > { %483 = vsyncadd (!%p397_p2), %s322_s9, 4294967040  ;;  %p13_p3 = scmp.ge.s32.totalorder %s547_s18, 4   ;;  %s655_s12 = smov %s490_s13 }
  0xcf   : > { %s656_s13 = smov %s494_s14  ;;  %s657_s14 = smov %s558_s21 }
  0xd0   : > { %s658_s15 = smov %s547_s18  ;;  %15 = sbr.rel (!%p13_p3) target bundleno = 3 (0x3), region = 70 }
  0xd7   :  { %327 = vsyncpa [#allocation3], 1 }
  0xd8   :  { %329 = vsyncpa [#allocation3 + $0x1], 1 }

</bundles_post_ra>
